<compile_context>
chip_gen: v7x
topology: tpu7x:2x2x1
jax: 0.10.0
libtpu: 0.0.40
codegen_flags: <defaults>
</compile_context>

<pallas_src>
import math

import jax
import jax.numpy as jnp
from jax.experimental import pallas as pl
from jax.experimental.pallas import tpu as pltpu


def _round_up(n, m):
    return ((n + m - 1) // m) * m


def _mlp_kernel(x_ref, w1_ref, b1_ref, w2_ref, b2_ref, w3_ref, b3_ref, o_ref):
    """One (tb, 768) f32 batch tile -> (tb, 18) f32 output tile, fused 3-layer MLP."""
    # Cast to bf16 in-kernel (VPU work hides under the HBM DMA; avoids a separate
    # convert+materialize pass over x in HBM).
    x = x_ref[...].astype(w1_ref.dtype)                                  # (tb, 768) bf16

    # Layer 1: (tb,768) @ (768,128) with f32 accumulation; bias + ReLU in f32.
    h1 = jnp.dot(x, w1_ref[...], preferred_element_type=jnp.float32)
    h1 = jnp.maximum(h1 + b1_ref[...], 0.0)

    # Layer 2: padded to 128 lanes (cols 64..127 of w2/b2 are exactly zero -> h2 zero there).
    h2 = jnp.dot(h1.astype(w2_ref.dtype), w2_ref[...],
                 preferred_element_type=jnp.float32)
    h2 = jnp.maximum(h2 + b2_ref[...], 0.0)

    # Layer 3: w3 padded along rows only to (128, 18) (rows 64..127 zero), so the
    # result is already 18 wide and the HBM writeback carries no padding.
    h3 = jnp.dot(h2.astype(w3_ref.dtype), w3_ref[...],
                 preferred_element_type=jnp.float32)
    o_ref[...] = (h3 + b3_ref[...]).astype(o_ref.dtype)


def prepare_params(params, compute_dtype=jnp.bfloat16):
    """One-time param prep: zero-pad layer-2 to 128 lanes / layer-3 rows, cast to bf16."""
    def pad2(a, rows, cols):
        r, c = a.shape
        return jnp.pad(a, ((0, rows - r), (0, cols - c)))

    return {
        "w1": params["w1"].astype(compute_dtype),                      # (768, 128)
        "b1": params["b1"].astype(jnp.float32),                        # (1, 128)
        "w2": pad2(params["w2"], 128, 128).astype(compute_dtype),      # (128, 128) cols 64.. zero
        "b2": pad2(params["b2"], 1, 128).astype(jnp.float32),          # (1, 128)
        "w3": pad2(params["w3"], 128, 18).astype(compute_dtype),       # (128, 18)  rows 64.. zero
        "b3": params["b3"].astype(jnp.float32),                        # (1, 18)
    }


def simple_nn_forward(x, prepared, *, tile_rows=1024):
    """x: (B, 768) float32. prepared: output of prepare_params(). Returns (B, 18) f32."""
    B, f_in = x.shape
    assert f_in == 768, f_in

    # Batch tile: big tiles for roofline efficiency, but capped so the grid has at
    # least ~4 steps (megacore / v7x two-TC spread); rounded to 16 for bf16 packing.
    tb = max(16, _round_up(pl.cdiv(B, 4), 16))
    tb = min(tb, tile_rows)
    grid = (pl.cdiv(B, tb),)   # ragged last tile handled by Pallas (rows beyond B discarded)

    flops = 2 * B * (768 * 128 + 128 * 128 + 128 * 18)
    bytes_accessed = (
        B * 768 * 4                                                     # x read (f32)
        + sum(int(v.size) * v.dtype.itemsize for v in prepared.values())
        + B * 18 * 4                                                    # output write (f32)
    )

    out = pl.pallas_call(
        _mlp_kernel,
        out_shape=jax.ShapeDtypeStruct((B, 18), jnp.float32),
        grid=grid,
        in_specs=[
            pl.BlockSpec((tb, 768), lambda i: (i, 0)),      # x tile (streamed, f32)
            pl.BlockSpec((768, 128), lambda i: (0, 0)),     # w1 (VMEM-resident across steps)
            pl.BlockSpec((1, 128), lambda i: (0, 0)),       # b1
            pl.BlockSpec((128, 128), lambda i: (0, 0)),     # w2 (lane-padded)
            pl.BlockSpec((1, 128), lambda i: (0, 0)),       # b2 (lane-padded)
            pl.BlockSpec((128, 18), lambda i: (0, 0)),      # w3 (row-padded only)
            pl.BlockSpec((1, 18), lambda i: (0, 0)),        # b3
        ],
        out_specs=pl.BlockSpec((tb, 18), lambda i: (i, 0)),
        compiler_params=pltpu.CompilerParams(dimension_semantics=("parallel",)),
        cost_estimate=pl.CostEstimate(
            flops=int(flops), transcendentals=0, bytes_accessed=int(bytes_accessed)),
    )(x, prepared["w1"], prepared["b1"], prepared["w2"], prepared["b2"],
      prepared["w3"], prepared["b3"])

    return out


def init_params(key):
    """Matches SimpleNN._initialize_weights: kaiming_uniform_(nonlinearity='relu'), zero bias."""
    def kaiming_uniform(k, fan_in, fan_out):
        gain = math.sqrt(2.0)                       # nonlinearity='relu'
        bound = gain * math.sqrt(3.0 / fan_in)
        # stored as (in, out) — transpose of PyTorch's (out, in)
        return jax.random.uniform(k, (fan_in, fan_out), jnp.float32, -bound, bound)

    k1, k2, k3 = jax.random.split(key, 3)
    return {
        "w1": kaiming_uniform(k1, 768, 128), "b1": jnp.zeros((1, 128), jnp.float32),
        "w2": kaiming_uniform(k2, 128, 64),  "b2": jnp.zeros((1, 64), jnp.float32),
        "w3": kaiming_uniform(k3, 64, 18),   "b3": jnp.zeros((1, 18), jnp.float32),
    }


def _reference(x, p, in_dtype=jnp.float32):
    """Plain-JAX reference with the same (optionally bf16) matmul inputs + f32 accumulation."""
    w1, w2, w3 = (p["w1"].astype(in_dtype), p["w2"].astype(in_dtype), p["w3"].astype(in_dtype))
    h = jnp.dot(x.astype(in_dtype), w1, preferred_element_type=jnp.float32) + p["b1"]
    h = jnp.maximum(h, 0.0)
    h = jnp.dot(h.astype(in_dtype), w2, preferred_element_type=jnp.float32) + p["b2"]
    h = jnp.maximum(h, 0.0)
    return jnp.dot(h.astype(in_dtype), w3, preferred_element_type=jnp.float32) + p["b3"]


if __name__ == "__main__":
    key = jax.random.PRNGKey(0)
    kx, kx2, kp = jax.random.split(key, 3)

    params = init_params(kp)
    prepared = prepare_params(params)          # pad + cast once, outside the kernel

    # Small batch (single grid step, partial tile).
    B = 8
    x = jax.random.normal(kx, (B, 768), jnp.float32)
    out = jax.block_until_ready(simple_nn_forward(x, prepared))
    assert out.shape == (B, 18), out.shape
    assert jnp.allclose(out, _reference(x, params, jnp.bfloat16), atol=2e-3, rtol=2e-3), \
        "mismatch vs bf16 reference (B=8)"
    assert jnp.allclose(out, _reference(x, params, jnp.float32), atol=5e-2, rtol=5e-2), \
        "mismatch vs f32 reference (B=8)"

    # Ragged multi-step grid (grid=(4,), last tile partial) to exercise the tiling path.
    B2 = 50
    x2 = jax.random.normal(kx2, (B2, 768), jnp.float32)
    out2 = jax.block_until_ready(simple_nn_forward(x2, prepared))
    assert out2.shape == (B2, 18), out2.shape
    assert jnp.allclose(out2, _reference(x2, params, jnp.bfloat16), atol=2e-3, rtol=2e-3), \
        "mismatch vs bf16 reference (B=50)"

    print("KERNEL_OK")
</pallas_src>

<mosaic_0001>
module attributes {stable_mosaic.version = 11 : i64} {
  func.func @_mlp_kernel(%arg0: i32, %arg1: memref<16x768xf32, #tpu.memory_space<vmem>>, %arg2: memref<768x128xbf16, #tpu.memory_space<vmem>>, %arg3: memref<1x128xf32, #tpu.memory_space<vmem>>, %arg4: memref<128x128xbf16, #tpu.memory_space<vmem>>, %arg5: memref<1x128xf32, #tpu.memory_space<vmem>>, %arg6: memref<128x18xbf16, #tpu.memory_space<vmem>>, %arg7: memref<1x18xf32, #tpu.memory_space<vmem>>, %arg8: memref<16x18xf32, #tpu.memory_space<vmem>>) attributes {dimension_semantics = [#tpu.dimension_semantics<parallel>], iteration_bounds = array<i64: 1>, scalar_prefetch = 0 : i64, scratch_operands = 0 : i64, tpu.core_type = #tpu.core_type<tc>, window_params = [{transform_indices = @transform_0, window_bounds = array<i64: 16, 768>}, {pipeline_mode = #tpu.pipeline_mode<synchronous>, transform_indices = @transform_1, window_bounds = array<i64: 768, 128>}, {pipeline_mode = #tpu.pipeline_mode<synchronous>, transform_indices = @transform_2, window_bounds = array<i64: 1, 128>}, {pipeline_mode = #tpu.pipeline_mode<synchronous>, transform_indices = @transform_3, window_bounds = array<i64: 128, 128>}, {pipeline_mode = #tpu.pipeline_mode<synchronous>, transform_indices = @transform_4, window_bounds = array<i64: 1, 128>}, {pipeline_mode = #tpu.pipeline_mode<synchronous>, transform_indices = @transform_5, window_bounds = array<i64: 128, 18>}, {pipeline_mode = #tpu.pipeline_mode<synchronous>, transform_indices = @transform_6, window_bounds = array<i64: 1, 18>}, {transform_indices = @transform_7, window_bounds = array<i64: 16, 18>}]} {
    %c0 = arith.constant 0 : index
    %c0_0 = arith.constant 0 : index
    %0 = vector.load %arg1[%c0, %c0_0] : memref<16x768xf32, #tpu.memory_space<vmem>>, vector<16x768xf32>
    %1 = arith.truncf %0 : vector<16x768xf32> to vector<16x768xbf16>
    %c0_1 = arith.constant 0 : index
    %c0_2 = arith.constant 0 : index
    %2 = vector.load %arg2[%c0_1, %c0_2] : memref<768x128xbf16, #tpu.memory_space<vmem>>, vector<768x128xbf16>
    %cst = arith.constant dense<0.000000e+00> : vector<16x128xf32>
    %3 = tpu.matmul %1, %2, %cst {dimension_numbers = #tpu.dot_dimension_numbers<[1], [0], [0], [1], [0, 0, 1, 1], [], []>} : vector<16x768xbf16>, vector<768x128xbf16>, vector<16x128xf32> -> vector<16x128xf32>
    %c0_3 = arith.constant 0 : index
    %c0_4 = arith.constant 0 : index
    %4 = vector.load %arg3[%c0_3, %c0_4] : memref<1x128xf32, #tpu.memory_space<vmem>>, vector<1x128xf32>
    %5 = vector.broadcast %4 : vector<1x128xf32> to vector<16x128xf32>
    %6 = arith.addf %3, %5 : vector<16x128xf32>
    %cst_5 = arith.constant 0.000000e+00 : f32
    %7 = vector.broadcast %cst_5 : f32 to vector<16x128xf32>
    %8 = arith.maximumf %6, %7 : vector<16x128xf32>
    %9 = arith.truncf %8 : vector<16x128xf32> to vector<16x128xbf16>
    %c0_6 = arith.constant 0 : index
    %c0_7 = arith.constant 0 : index
    %10 = vector.load %arg4[%c0_6, %c0_7] : memref<128x128xbf16, #tpu.memory_space<vmem>>, vector<128x128xbf16>
    %cst_8 = arith.constant dense<0.000000e+00> : vector<16x128xf32>
    %11 = tpu.matmul %9, %10, %cst_8 {dimension_numbers = #tpu.dot_dimension_numbers<[1], [0], [0], [1], [0, 0, 1, 1], [], []>} : vector<16x128xbf16>, vector<128x128xbf16>, vector<16x128xf32> -> vector<16x128xf32>
    %c0_9 = arith.constant 0 : index
    %c0_10 = arith.constant 0 : index
    %12 = vector.load %arg5[%c0_9, %c0_10] : memref<1x128xf32, #tpu.memory_space<vmem>>, vector<1x128xf32>
    %13 = vector.broadcast %12 : vector<1x128xf32> to vector<16x128xf32>
    %14 = arith.addf %11, %13 : vector<16x128xf32>
    %cst_11 = arith.constant 0.000000e+00 : f32
    %15 = vector.broadcast %cst_11 : f32 to vector<16x128xf32>
    %16 = arith.maximumf %14, %15 : vector<16x128xf32>
    %17 = arith.truncf %16 : vector<16x128xf32> to vector<16x128xbf16>
    %c0_12 = arith.constant 0 : index
    %c0_13 = arith.constant 0 : index
    %18 = vector.load %arg6[%c0_12, %c0_13] : memref<128x18xbf16, #tpu.memory_space<vmem>>, vector<128x18xbf16>
    %cst_14 = arith.constant dense<0.000000e+00> : vector<16x18xf32>
    %19 = tpu.matmul %17, %18, %cst_14 {dimension_numbers = #tpu.dot_dimension_numbers<[1], [0], [0], [1], [0, 0, 1, 1], [], []>} : vector<16x128xbf16>, vector<128x18xbf16>, vector<16x18xf32> -> vector<16x18xf32>
    %c0_15 = arith.constant 0 : index
    %c0_16 = arith.constant 0 : index
    %20 = vector.load %arg7[%c0_15, %c0_16] : memref<1x18xf32, #tpu.memory_space<vmem>>, vector<1x18xf32>
    %21 = vector.broadcast %20 : vector<1x18xf32> to vector<16x18xf32>
    %22 = arith.addf %19, %21 : vector<16x18xf32>
    %c0_17 = arith.constant 0 : index
    %c0_18 = arith.constant 0 : index
    %23 = vector.load %arg8[%c0_17, %c0_18] : memref<16x18xf32, #tpu.memory_space<vmem>>, vector<16x18xf32>
    tpu.vector_store %arg8[%c0_17, %c0_18], %22 {strides = array<i32>} : memref<16x18xf32, #tpu.memory_space<vmem>>, vector<16x18xf32>,
    return
  }
  func.func @transform_0(%arg0: i32) -> (i32, i32) {
    %c0_i32 = arith.constant 0 : i32
    %c0_i32_0 = arith.constant 0 : i32
    return %arg0, %c0_i32 : i32, i32
  }
  func.func @transform_1(%arg0: i32) -> (i32, i32) {
    %c0_i32 = arith.constant 0 : i32
    %c0_i32_0 = arith.constant 0 : i32
    %c0_i32_1 = arith.constant 0 : i32
    return %c0_i32, %c0_i32_0 : i32, i32
  }
  func.func @transform_2(%arg0: i32) -> (i32, i32) {
    %c0_i32 = arith.constant 0 : i32
    %c0_i32_0 = arith.constant 0 : i32
    %c0_i32_1 = arith.constant 0 : i32
    return %c0_i32, %c0_i32_0 : i32, i32
  }
  func.func @transform_3(%arg0: i32) -> (i32, i32) {
    %c0_i32 = arith.constant 0 : i32
    %c0_i32_0 = arith.constant 0 : i32
    %c0_i32_1 = arith.constant 0 : i32
    return %c0_i32, %c0_i32_0 : i32, i32
  }
  func.func @transform_4(%arg0: i32) -> (i32, i32) {
    %c0_i32 = arith.constant 0 : i32
    %c0_i32_0 = arith.constant 0 : i32
    %c0_i32_1 = arith.constant 0 : i32
    return %c0_i32, %c0_i32_0 : i32, i32
  }
  func.func @transform_5(%arg0: i32) -> (i32, i32) {
    %c0_i32 = arith.constant 0 : i32
    %c0_i32_0 = arith.constant 0 : i32
    %c0_i32_1 = arith.constant 0 : i32
    return %c0_i32, %c0_i32_0 : i32, i32
  }
  func.func @transform_6(%arg0: i32) -> (i32, i32) {
    %c0_i32 = arith.constant 0 : i32
    %c0_i32_0 = arith.constant 0 : i32
    %c0_i32_1 = arith.constant 0 : i32
    return %c0_i32, %c0_i32_0 : i32, i32
  }
  func.func @transform_7(%arg0: i32) -> (i32, i32) {
    %c0_i32 = arith.constant 0 : i32
    %c0_i32_0 = arith.constant 0 : i32
    return %arg0, %c0_i32 : i32, i32
  }
}

</mosaic_0001>

<bundles_post_ra>
// kernel: tpu_custom_call.1
= control target key start
LH: loop header
LB: loop body
LE: loop exit
PB: predicated region body
PF: predicated region fallthrough
CT: control target
= control target key end

     0   :  { %12 = vsyncpa [#allocation3], 0  ;;  %s1339_s0 = inlined_call_operand.hbm [shape: f32[8,768], index: 0, kind: input, shape index: {}]   ;;  %s1340_s1 = inlined_call_operand.hbm [shape: bf16[768,128], index: 1, kind: input, shape index: {}]   ;;  %s1341_s2 = inlined_call_operand.vmem [shape: f32[1,128], index: 2, kind: input, shape index: {}]   ;;  %s1342_s3 = inlined_call_operand.vmem [shape: bf16[128,128], index: 3, kind: input, shape index: {}]   ;;  %s1343_s4 = inlined_call_operand.vmem [shape: f32[1,128], index: 4, kind: input, shape index: {}]   ;;  %s1344_s5 = inlined_call_operand.vmem [shape: bf16[128,18], index: 5, kind: input, shape index: {}]   ;;  %s1345_s6 = inlined_call_operand.vmem [shape: f32[1,18], index: 6, kind: input, shape index: {}]   ;;  %s1346_s7 = inlined_call_operand.hbm [shape: f32[8,18], index: 7, kind: output, shape index: {}]  }
   0x1   :  { %13 = vsyncpa [#allocation6], 0 }
   0x2   :  { %14 = vsyncpa [#allocation4], 0 }
   0x3   :  { %19 = vsyncadd [#allocation3], 768  ;;  %s1177_s24 = smov [#allocation2]   ;;  %s1105_s28 = scalar_lea.hbm %s1339_s0, 768 }
   0x4   :  { %s20_s25 = sshll.u32 %s1177_s24, 4  ;;  %p1106_p0 = scmp.ne.s32.totalorder %s1339_s0, %s1105_s28  ;;  %s21_s25 = int_to_ptr.vmem [resolvable:$true] %s20_s25 }
   0x5   :  { %p1109_p1 = scmp.lt.u32.totalorder %s1105_s28, %s1339_s0 }
   0x7   :  { %p1111_p2 = pnand %p1109_p1, %p1106_p0 }
   0x9   :  { %1114 = shalt.err (!%p1111_p2)
}
   0xa   :  { %s1115_s10 = scalar_lea.vmem %s21_s25, 768  ;;  %s1119_s11 = scalar_lea.vmem %s21_s25, 1536 }
   0xb   :  { %p1116_p3 = scmp.ne.s32.totalorder %s21_s25, %s1115_s10  ;;  %p1120_p4 = scmp.lt.s32.totalorder %s21_s25, %s21_s25 }
   0xc   :  { %p1121_p5 = scmp.lt.s32.totalorder %s1119_s11, %s1115_s10 }
   0xe   :  { %p1122_p6 = por %p1121_p5, %p1120_p4 }
  0x10   :  { %p1123_p7 = pnand %p1122_p6, %p1116_p3 }
  0x12   :  { %1126 = shalt.err (!%p1123_p7)
}
  0x13   :  { %s1178_s12 = smov 768   ;;  %s1179_s13 = smov 48  }
  0x14   :  { %26 = dma.hbm_to_vmem [thread:$0]  %s1339_s0, 768, %s21_s25, [#allocation3], %s1178_s12, %s1178_s12, %s1179_s13  }
  0x15   :  { %s1180_s16 = smov [#allocation5]   ;;  %s1127_s20 = scalar_lea.hbm %s1340_s1, 6144 }
  0x16   :  { %s32_s17 = sshll.u32 %s1180_s16, 4  ;;  %p1128_p8 = scmp.ne.s32.totalorder %s1340_s1, %s1127_s20  ;;  %s33_s17 = int_to_ptr.vmem [resolvable:$true] %s32_s17 }
  0x17   :  { %p1131_p9 = scmp.lt.u32.totalorder %s1127_s20, %s1340_s1 }
  0x19   :  { %p1133_p10 = pnand %p1131_p9, %p1128_p8 }
  0x1b   :  { %1136 = shalt.err (!%p1133_p10)
}
  0x1c   :  { %s1137_s26 = scalar_lea.vmem %s33_s17, 6144  ;;  %p1142_p12 = scmp.lt.s32.totalorder %s33_s17, %s33_s17 }
  0x1d   :  { %p1138_p11 = scmp.ne.s32.totalorder %s33_s17, %s1137_s26  ;;  %p1143_p13 = scmp.lt.s32.totalorder %s1137_s26, %s1137_s26 }
  0x1f   :  { %p1144_p0 = por %p1143_p13, %p1142_p12 }
  0x21   :  { %p1145_p1 = pnand %p1144_p0, %p1138_p11 }
  0x23   :  { %1148 = shalt.err (!%p1145_p1)
}
  0x24   :  { %s1181_s0 = smov 64   ;;  %s1182_s25 = smov 4  }
  0x25   :  { %38 = dma.hbm_to_vmem [thread:$0]  %s1340_s1, 6144, %s33_s17, [#allocation6], %s1181_s0, %s1181_s0, %s1182_s25  }
  0x26   :  { %1171 = dma.done.wait [#allocation3], 1536  }
  0x27   :  { %1172 = vsyncadd [#allocation3], 4294965760 }
  0x28   :  { %1173 = dma.done.wait [#allocation6], 6144  }
  0x29   :  { %1174 = vsyncadd [#allocation6], 4294961152  ;;  %v1041_v0 = vld [vmem:[#allocation5 + $0x40] sm:$0xff]   ;;  %v1045_v4 = vld [vmem:[#allocation5 + $0x48] sm:$0xff]   ;;  %vm1184_vm0 = vmmov 0   ;;  %vm818_vm1 = vcmask 146432  }
  0x2a   :  { %v1042_v1 = vld [vmem:[#allocation5] sm:$0xff]   ;;  %906 = vmatprep.subr.bf16.mxu0 %v1041_v0  ;;  %v1046_v5 = vld [vmem:[#allocation5 + $0x8] sm:$0xff]   ;;  %v1049_v8 = vld [vmem:[#allocation5 + $0x50] sm:$0xff]  }
  0x2b   :  { %v1043_v2 = vld [vmem:[#allocation5 + $0xc0] sm:$0xff]   ;;  %907 = vmatpush3.bf16.msra.mxu0 %v1042_v1  ;;  %v1047_v6 = vld [vmem:[#allocation5 + $0xc8] sm:$0xff]   ;;  %v1050_v9 = vld [vmem:[#allocation5 + $0x10] sm:$0xff]  }
  0x2c   :  { %v1044_v3 = vld [vmem:[#allocation5 + $0x80] sm:$0xff]   ;;  %928 = vmatprep.subr.bf16.mxu1 %v1043_v2  ;;  %908 = vmatprep.subr.bf16.mxu0 %v1045_v4  ;;  %v1048_v7 = vld [vmem:[#allocation5 + $0x88] sm:$0xff]   ;;  %v1051_v10 = vld [vmem:[#allocation5 + $0xd0] sm:$0xff]  }
  0x2d   :  { %929 = vmatpush3.bf16.msra.mxu1 %v1044_v3  ;;  %v1052_v11 = vld [vmem:[#allocation5 + $0x90] sm:$0xff]   ;;  %v1053_v12 = vld [vmem:[#allocation5 + $0x58] sm:$0xff]   ;;  %v1057_v16 = vld [vmem:[#allocation5 + $0x60] sm:$0xff]   ;;  %v1183_v3 = vmov 0.0  }
  0x2e   :  { %930 = vmatprep.subr.bf16.mxu1 %v1047_v6  ;;  %v1054_v13 = vld [vmem:[#allocation5 + $0x18] sm:$0xff]   ;;  %v1058_v17 = vld [vmem:[#allocation5 + $0x20] sm:$0xff]   ;;  %v1061_v20 = vld [vmem:[#allocation5 + $0x68] sm:$0xff]  }
  0x2f   :  { %909 = vmatpush3.bf16.msra.mxu0 %v1046_v5  ;;  %v1055_v14 = vld [vmem:[#allocation5 + $0xd8] sm:$0xff]   ;;  %v1059_v18 = vld [vmem:[#allocation5 + $0xe0] sm:$0xff]   ;;  %v1062_v21 = vld [vmem:[#allocation5 + $0x28] sm:$0xff]  }
  0x30   :  { %910 = vmatprep.subr.bf16.mxu0 %v1049_v8  ;;  %v1056_v15 = vld [vmem:[#allocation5 + $0x98] sm:$0xff]   ;;  %v1060_v19 = vld [vmem:[#allocation5 + $0xa0] sm:$0xff]   ;;  %v1063_v22 = vld [vmem:[#allocation5 + $0xe8] sm:$0xff]  }
  0x31   :  { %931 = vmatpush3.bf16.msra.mxu1 %v1048_v7  ;;  %v1064_v23 = vld [vmem:[#allocation5 + $0xa8] sm:$0xff]   ;;  %v1065_v24 = vld [vmem:[#allocation5 + $0x70] sm:$0xff]   ;;  %v1069_v28 = vld [vmem:[#allocation5 + $0x78] sm:$0xff]  }
  0x32   :  { %932 = vmatprep.subr.bf16.mxu1 %v1051_v10  ;;  %v1066_v25 = vld [vmem:[#allocation5 + $0x30] sm:$0xff]   ;;  %v1070_v29 = vld [vmem:[#allocation5 + $0x38] sm:$0xff]   ;;  %v57_v31 = vld [vmem:[#allocation2 + $0x8] sm:$0xff] }
  0x33   :  { %911 = vmatpush3.bf16.msra.mxu0 %v1050_v9  ;;  %v1067_v26 = vld [vmem:[#allocation5 + $0xf0] sm:$0xff]   ;;  %v1071_v30 = vld [vmem:[#allocation5 + $0xf8] sm:$0xff]   ;;  %v56_v35 = vld [vmem:[#allocation2] sm:$0xff] }
  0x34   :  { %912 = vmatprep.subr.bf16.mxu0 %v1053_v12  ;;  %v1068_v27 = vld [vmem:[#allocation5 + $0xb0] sm:$0xff]   ;;  %v63_v32 = vld [vmem:[#allocation2 + $0x38] sm:$0xff]  ;;  %v1073_v38 = vld [vmem:[#allocation5 + $0x140] sm:$0xff]  }
  0x35   :  { %933 = vmatpush3.bf16.msra.mxu1 %v1052_v11  ;;  %v69_v33 = vpack.c.bf16 %v63_v32, %v57_v31  ;;  %v1072_v34 = vld [vmem:[#allocation5 + $0xb8] sm:$0xff]   ;;  %v62_v36 = vld [vmem:[#allocation2 + $0x30] sm:$0xff]  ;;  %v65_v40 = vld [vmem:[#allocation2 + $0x48] sm:$0xff] }
  0x36   :  { %934 = vmatprep.subr.bf16.mxu1 %v1055_v14  ;;  %v68_v37 = vpack.c.bf16 %v62_v36, %v56_v35  ;;  %v59_v39 = vld [vmem:[#allocation2 + $0x18] sm:$0xff]  ;;  %v1074_v42 = vld [vmem:[#allocation5 + $0x100] sm:$0xff]   ;;  %v58_v43 = vld [vmem:[#allocation2 + $0x10] sm:$0xff] }
  0x37   :  { %913 = vmatpush3.bf16.msra.mxu0 %v1054_v13  ;;  %497 = vmatprep.mubr.bf16.mxu0 %v69_v33  ;;  %v71_v41 = vpack.c.bf16 %v65_v40, %v59_v39  ;;  %v64_v44 = vld [vmem:[#allocation2 + $0x40] sm:$0xff]  ;;  %v1075_v46 = vld [vmem:[#allocation5 + $0x148] sm:$0xff]   ;;  %v1077_v48 = vld [vmem:[#allocation5 + $0x150] sm:$0xff]  }
  0x38   :  { %914 = vmatprep.subr.bf16.mxu0 %v1057_v16  ;;  %v70_v45 = vpack.c.bf16 %v64_v44, %v58_v43  ;;  %v1076_v47 = vld [vmem:[#allocation5 + $0x108] sm:$0xff]   ;;  %v1078_v49 = vld [vmem:[#allocation5 + $0x110] sm:$0xff]   ;;  %v1079_v50 = vld [vmem:[#allocation5 + $0x158] sm:$0xff]  }
  0x39   :  { %935 = vmatpush3.bf16.msra.mxu1 %v1056_v15  ;;  %538 = vmatprep.mubr.bf16.mxu1 %v71_v41  ;;  %v1080_v51 = vld [vmem:[#allocation5 + $0x118] sm:$0xff]   ;;  %v1081_v52 = vld [vmem:[#allocation5 + $0x160] sm:$0xff]   ;;  %v1083_v54 = vld [vmem:[#allocation5 + $0x168] sm:$0xff]  }
  0x3a   :  { %936 = vmatprep.subr.bf16.mxu1 %v1059_v18  ;;  %v1082_v53 = vld [vmem:[#allocation5 + $0x120] sm:$0xff]   ;;  %v61_v55 = vld [vmem:[#allocation2 + $0x28] sm:$0xff]  ;;  %v67_v57 = vld [vmem:[#allocation2 + $0x58] sm:$0xff] }
  0x3b   :  { %915 = vmatpush3.bf16.msra.mxu0 %v1058_v17  ;;  %v1084_v56 = vld [vmem:[#allocation5 + $0x128] sm:$0xff]   ;;  %v1085_v58 = vld [vmem:[#allocation5 + $0x170] sm:$0xff]   ;;  %v73_v59 = vpack.c.bf16 %v67_v57, %v61_v55  ;;  %v1087_v61 = vld [vmem:[#allocation5 + $0x178] sm:$0xff]  }
  0x3c   :  { %916 = vmatprep.subr.bf16.mxu0 %v1061_v20  ;;  %v1086_v60 = vld [vmem:[#allocation5 + $0x130] sm:$0xff]   ;;  %v1088_v62 = vld [vmem:[#allocation5 + $0x138] sm:$0xff]   ;;  %v60_v63 = vld [vmem:[#allocation2 + $0x20] sm:$0xff] }
  0x3d   :  { %937 = vmatpush3.bf16.msra.mxu1 %v1060_v19  ;;  %v66_v0 = vld [vmem:[#allocation2 + $0x50] sm:$0xff]  ;;  %v1089_v2 = vld [vmem:[%s1342_s3] sm:$0xff]   ;;  %v1090_v4 = vld [vmem:[%s1342_s3 + $0x8] sm:$0xff]  }
  0x3e   :  { %938 = vmatprep.subr.bf16.mxu1 %v1063_v22  ;;  %v72_v1 = vpack.c.bf16 %v66_v0, %v60_v63  ;;  %v1091_v5 = vld [vmem:[%s1342_s3 + $0x10] sm:$0xff]   ;;  %v1092_v6 = vld [vmem:[%s1342_s3 + $0x18] sm:$0xff]   ;;  %v1093_v7 = vld [vmem:[%s1342_s3 + $0x20] sm:$0xff]  }
  0x3f   :  { %917 = vmatpush3.bf16.msra.mxu0 %v1062_v21  ;;  %v1094_v8 = vld [vmem:[%s1342_s3 + $0x28] sm:$0xff]   ;;  %v1095_v9 = vld [vmem:[%s1342_s3 + $0x30] sm:$0xff]   ;;  %v1096_v10 = vld [vmem:[%s1342_s3 + $0x38] sm:$0xff]  }
  0x40   :  { %918 = vmatprep.subr.bf16.mxu0 %v1065_v24  ;;  %v1097_v11 = vld [vmem:[%s1344_s5] sm:$0xff]   ;;  %v1098_v12 = vld [vmem:[%s1344_s5 + $0x8] sm:$0xff]   ;;  %v1099_v13 = vld [vmem:[%s1344_s5 + $0x10] sm:$0xff]  }
  0x41   :  { %939 = vmatpush3.bf16.msra.mxu1 %v1064_v23  ;;  %v1100_v14 = vld [vmem:[%s1344_s5 + $0x18] sm:$0xff]   ;;  %v1101_v15 = vld [vmem:[%s1344_s5 + $0x20] sm:$0xff]   ;;  %v1102_v16 = vld [vmem:[%s1344_s5 + $0x28] sm:$0xff]  }
  0x42   :  { %940 = vmatprep.subr.bf16.mxu1 %v1067_v26  ;;  %v839_v18 = vld [vmem:[%s1341_s2] ss:$0 sm:$0xff] }
  0x43   :  { %919 = vmatpush3.bf16.msra.mxu0 %v1066_v25  ;;  %v897_v57 = vld [vmem:[%s1345_s6] ss:$0 sm:$0xff] }
  0x44   :  { %920 = vmatprep.subr.bf16.mxu0 %v1069_v28 }
  0x45   :  { %941 = vmatpush3.bf16.msra.mxu1 %v1068_v27 }
  0x46   :  { %942 = vmatprep.subr.bf16.mxu1 %v1071_v30 }
  0x47   :  { %921 = vmatpush3.bf16.msra.mxu0 %v1070_v29 }
  0x48   :  { %950 = vmatprep.subr.bf16.mxu0 %v1073_v38 }
  0x49   :  { %943 = vmatpush3.bf16.msra.mxu1 %v1072_v34 }
  0x4a   :  { %498 = vmatmul.mubr.bf16.vlgmr.msra.gmra.mrb[0].mxu0 %v68_v37  ;;  %990 = vmatprep.subr.bf16.mxu1 %v1183_v3 }
  0x4b   :  { %951 = vmatpush3.bf16.msra.mxu0 %v1074_v42  ;;  %579 = vmatprep.mubr.bf16.mxu0 %v73_v59 }
  0x4c   :  { %539 = vmatmul.mubr.bf16.vlgmr.msra.gmra.mrb[0].mxu1 %v70_v45  ;;  %952 = vmatprep.subr.bf16.mxu0 %v1075_v46  ;;  %v1103_v45 = vld [vmem:[%s1344_s5 + $0x30] sm:$0xff]   ;;  %v1104_v46 = vld [vmem:[%s1344_s5 + $0x38] sm:$0xff]  }
  0x4d   :  { %991 = vmatpush3.bf16.msra.mxu1 %v1089_v2  ;;  %1006 = vmatprep.mubr.msk.bf16.mxu1 %vm1184_vm0, %v1183_v3 }
  0x4e   :  { %992 = vmatprep.subr.bf16.mxu1 %v1183_v3 }
  0x4f   :  { %953 = vmatpush3.bf16.msra.mxu0 %v1076_v47  ;;  %v888_v47 = vld [vmem:[%s1343_s4] ss:$0 sm:$0xff] }
  0x50   :  { %954 = vmatprep.subr.bf16.mxu0 %v1077_v48 }
  0x51   :  { %993 = vmatpush3.bf16.msra.mxu1 %v1090_v4 }
  0x52   :  { %994 = vmatprep.subr.bf16.mxu1 %v1183_v3 }
  0x53   :  { %955 = vmatpush3.bf16.msra.mxu0 %v1078_v49 }
  0x54   :  { %956 = vmatprep.subr.bf16.mxu0 %v1079_v50 }
  0x55   :  { %995 = vmatpush3.bf16.msra.mxu1 %v1091_v5 }
  0x56   :  { %996 = vmatprep.subr.bf16.mxu1 %v1183_v3 }
  0x57   :  { %957 = vmatpush3.bf16.msra.mxu0 %v1080_v51 }
  0x58   :  { %958 = vmatprep.subr.bf16.mxu0 %v1081_v52 }
  0x59   :  { %997 = vmatpush3.bf16.msra.mxu1 %v1092_v6 }
  0x5a   :  { %998 = vmatprep.subr.bf16.mxu1 %v1183_v3 }
  0x5b   :  { %959 = vmatpush3.bf16.msra.mxu0 %v1082_v53 }
  0x5c   :  { %960 = vmatprep.subr.bf16.mxu0 %v1083_v54 }
  0x5d   :  { %999 = vmatpush3.bf16.msra.mxu1 %v1093_v7 }
  0x5e   :  { %1000 = vmatprep.subr.bf16.mxu1 %v1183_v3 }
  0x5f   :  { %961 = vmatpush3.bf16.msra.mxu0 %v1084_v56 }
  0x60   :  { %962 = vmatprep.subr.bf16.mxu0 %v1085_v58 }
  0x61   :  { %1001 = vmatpush3.bf16.msra.mxu1 %v1094_v8 }
  0x62   :  { %1002 = vmatprep.subr.bf16.mxu1 %v1183_v3 }
  0x63   :  { %963 = vmatpush3.bf16.msra.mxu0 %v1086_v60 }
  0x64   :  { %964 = vmatprep.subr.bf16.mxu0 %v1087_v61 }
  0x65   :  { %1003 = vmatpush3.bf16.msra.mxu1 %v1095_v9 }
  0x66   :  { %1004 = vmatprep.subr.bf16.mxu1 %v1183_v3 }
  0x67   :  { %965 = vmatpush3.bf16.msra.mxu0 %v1088_v62 }
  0x68   :  { %1010 = vmatprep.subr.bf16.mxu0 %v1183_v3 }
  0x69   :  { %1005 = vmatpush3.bf16.msra.mxu1 %v1096_v10 }
  0x6a   :  { %580 = vmatmul.mubr.bf16.vlgmr.msra.gmra.mrb[4].mxu0 %v72_v1 }
  0x6b   :  { %1026 = vmatprep.mubr.msk.bf16.mxu0 %vm1184_vm0, %v1183_v3  ;;  %1011 = vmatpush3.bf16.msra.mxu0 %v1097_v11 }
  0x6c   :  { %1012 = vmatprep.subr.bf16.mxu0 %v1183_v3 }
  0x6f   :  { %1013 = vmatpush3.bf16.msra.mxu0 %v1098_v12 }
  0x70   :  { %1014 = vmatprep.subr.bf16.mxu0 %v1183_v3 }
  0x73   :  { %1015 = vmatpush3.bf16.msra.mxu0 %v1099_v13 }
  0x74   :  { %1016 = vmatprep.subr.bf16.mxu0 %v1183_v3 }
  0x77   :  { %1017 = vmatpush3.bf16.msra.mxu0 %v1100_v14 }
  0x78   :  { %1018 = vmatprep.subr.bf16.mxu0 %v1183_v3 }
  0x7b   :  { %1019 = vmatpush3.bf16.msra.mxu0 %v1101_v15 }
  0x7c   :  { %1020 = vmatprep.subr.bf16.mxu0 %v1183_v3 }
  0x7f   :  { %1021 = vmatpush3.bf16.msra.mxu0 %v1102_v16 }
  0x80   :  { %1022 = vmatprep.subr.bf16.mxu0 %v1183_v3 }
  0x83   :  { %1023 = vmatpush3.bf16.msra.mxu0 %v1103_v45 }
  0x84   :  { %1024 = vmatprep.subr.bf16.mxu0 %v1183_v3 }
  0x87   :  { %1025 = vmatpush3.bf16.msra.mxu0 %v1104_v46 }
 0x11d   :  { %v922_v17 = vpop.f32.mrb[0].mxu0 }
 0x11e   :  { %v923_v19 = vpop.f32.mrb[1].mxu0 }
 0x11f   :  { %v924_v20 = vadd.f32 %v923_v19, %v922_v17  ;;  %v925_v21 = vpop.f32.mrb[2].mxu0  ;;  %v944_v22 = vpop.f32.mrb[0].mxu1 }
 0x120   :  { %v926_v23 = vpop.f32.mrb[3].mxu0  ;;  %v945_v26 = vpop.f32.mrb[1].mxu1 }
 0x121   :  { %v500_v24 = vadd.f32 %v924_v20, %v839_v18  ;;  %v927_v25 = vadd.f32 %v926_v23, %v925_v21  ;;  %v946_v27 = vadd.f32 %v945_v26, %v944_v22  ;;  %v947_v28 = vpop.f32.mrb[2].mxu1 }
 0x122   :  { %v948_v30 = vpop.f32.mrb[3].mxu1 }
 0x123   :  { %v503_v29 = vadd.f32 %v927_v25, %v839_v18  ;;  %v541_v31 = vadd.f32 %v946_v27, %v500_v24  ;;  %v949_v32 = vadd.f32 %v948_v30, %v947_v28 }
 0x125   :  { %v544_v33 = vadd.f32 %v949_v32, %v503_v29 }
 0x13d   :  { %v966_v34 = vpop.f32.mrb[4].mxu0 }
 0x13e   :  { %v967_v35 = vpop.f32.mrb[5].mxu0 }
 0x13f   :  { %v968_v36 = vadd.f32 %v967_v35, %v966_v34  ;;  %v969_v37 = vpop.f32.mrb[6].mxu0 }
 0x140   :  { %v970_v38 = vpop.f32.mrb[7].mxu0 }
 0x141   :  { %v582_v39 = vadd.f32 %v968_v36, %v541_v31  ;;  %v971_v40 = vadd.f32 %v970_v38, %v969_v37 }
 0x143   :  { %v585_v41 = vadd.f32 %v971_v40, %v544_v33  ;;  %v588_v42 = vmax.f32 %v582_v39, 0.0 }
 0x145   :  { %v589_v43 = vmax.f32 %v585_v41, 0.0 }
 0x147   :  { %v590_v44 = vpack.c.bf16 %v589_v43, %v588_v42 }
 0x149   :  { %1007 = vmatmul.mubr.bf16.vlgmr.msra.gmra.mrb[4].mxu1 %v590_v44 }
 0x21c   :  { %v696_v48 = vpop.f32.mrb[4].mxu1 }
 0x21d   :  { %v697_v49 = vadd.f32 %v888_v47, %v696_v48  ;;  %v1008_v50 = vpop.f32.mrb[5].mxu1 }
 0x21e   :  { %v699_v51 = vpop.f32.mrb[6].mxu1 }
 0x21f   :  { %v700_v52 = vadd.f32 %v888_v47, %v699_v51  ;;  %v1009_v53 = vpop.f32.mrb[7].mxu1  ;;  %v703_v54 = vmax.f32 %v697_v49, 0.0 }
 0x221   :  { %v704_v55 = vmax.f32 %v700_v52, 0.0 }
 0x223   :  { %v705_v56 = vpack.c.bf16 %v704_v55, %v703_v54 }
 0x225   :  { %1027 = vmatmul.mubr.bf16.vlgmr.msra.gmra.mrb[8].mxu0 %v705_v56 }
 0x2f8   :  { %v811_v58 = vpop.f32.mrb[8].mxu0 }
 0x2f9   :  { %v812_v59 = vadd.f32 %v897_v57, %v811_v58  ;;  %v1028_v60 = vpop.f32.mrb[9].mxu0 }
 0x2fa   :  { %v814_v61 = vpop.f32.mrb[10].mxu0 }
 0x2fb   :  { %819 = vst.msk [vmem:[#allocation7] sm:$0xff] %vm818_vm1, %v812_v59  ;;  %v815_v62 = vadd.f32 %v897_v57, %v814_v61  ;;  %v1029_v63 = vpop.f32.mrb[11].mxu0 }
 0x2fd   :  { %820 = vst.msk [vmem:[#allocation7 + $0x8] sm:$0xff] %vm818_vm1, %v815_v62 }
 0x2fe   :  { %825 = vsyncadd [#allocation4], 128  ;;  %s1185_s4 = smov [#allocation7]  }
 0x2ff   :  { %s826_s5 = sshll.u32 %s1185_s4, 4  ;;  %s827_s5 = int_to_ptr.vmem [resolvable:$true] %s826_s5 }
 0x300   :  { %s1149_s16 = scalar_lea.vmem %s827_s5, 128  ;;  %s1153_s17 = scalar_lea.vmem %s827_s5, 256 }
 0x301   :  { %p1150_p2 = scmp.ne.s32.totalorder %s827_s5, %s1149_s16  ;;  %p1154_p3 = scmp.lt.s32.totalorder %s827_s5, %s827_s5 }
 0x302   :  { %p1155_p4 = scmp.lt.s32.totalorder %s1153_s17, %s1149_s16 }
 0x304   :  { %p1156_p5 = por %p1155_p4, %p1154_p3 }
 0x306   :  { %p1157_p6 = pnand %p1156_p5, %p1150_p2 }
 0x308   :  { %1160 = shalt.err (!%p1157_p6)
}
 0x309   :  { %s1161_s19 = scalar_lea.hbm %s1346_s7, 128 }
 0x30a   :  { %p1162_p7 = scmp.ne.s32.totalorder %s1346_s7, %s1161_s19  ;;  %p1165_p8 = scmp.lt.u32.totalorder %s1161_s19, %s1346_s7 }
 0x30c   :  { %p1167_p9 = pnand %p1165_p8, %p1162_p7 }
 0x30e   :  { %1170 = shalt.err (!%p1167_p9)
}
 0x30f   :  { %s1186_s24 = smov 128   ;;  %s1187_s26 = smov 8  }
 0x310   :  { %832 = dma.vmem_to_hbm [thread:$0]  %s827_s5, 128, %s1346_s7, [#allocation4], %s1186_s24, %s1186_s24, %s1187_s26  }
 0x311   :  { %1175 = dma.done.wait [#allocation4], 256  }
 0x312   :  { %1176 = vsyncadd [#allocation4], 4294967040 }
 0x313   :  { %836 = vsyncpa [#allocation3], 1 }
 0x314   :  { %837 = vsyncpa [#allocation6], 1 }
 0x315   :  { %838 = vsyncpa [#allocation4], 1 }

</bundles_post_ra>
